<compile_context>
chip_gen: v5e
topology: v5e:2x2
jax: 0.10.0
libtpu: 0.0.40
codegen_flags: <defaults>
</compile_context>

<pallas_src>
import functools

import jax
import jax.numpy as jnp
from jax.experimental import pallas as pl
from jax.experimental.pallas import tpu as pltpu


def _complex_inorm_kernel(x_ref, p_ref, o_ref, *, eps, hw):
    # x_ref: (TR, 2*HW) rows = (n, c) instances, lanes = interleaved re/im.
    # p_ref: (TR, 4) f32 packed affine columns [w_re, b_re, w_im, b_im].
    x = x_ref[...].astype(jnp.float32)
    L = x.shape[1]

    # Even lanes = real part.  (1, L) mask, broadcast where needed (cheaper
    # than a full-tile int32 iota + and + cmp every step).
    lane = jax.lax.broadcasted_iota(jnp.int32, (1, L), 1)
    is_real = jnp.bitwise_and(lane, 1) == 0

    inv_hw = jnp.float32(1.0 / hw)

    # Pass 1: per-component means via masked sums (imag sum = total - real).
    total = jnp.sum(x, axis=-1, keepdims=True)
    sum_r = jnp.sum(jnp.where(is_real, x, 0.0), axis=-1, keepdims=True)
    mean_r = sum_r * inv_hw
    mean_i = (total - sum_r) * inv_hw

    # Pass 2: biased variance of each component (two-pass form for stability).
    centered = x - jnp.where(is_real, mean_r, mean_i)
    c2 = centered * centered
    tot2 = jnp.sum(c2, axis=-1, keepdims=True)
    sum2_r = jnp.sum(jnp.where(is_real, c2, 0.0), axis=-1, keepdims=True)
    var_r = sum2_r * inv_hw
    var_i = (tot2 - sum2_r) * inv_hw

    # Unpack the per-row affine and fold it: y = centered * scale + shift.
    p = p_ref[...]
    wr = p[:, 0:1]
    br = p[:, 1:2]
    wi = p[:, 2:3]
    bi = p[:, 3:4]

    scale_r = jax.lax.rsqrt(var_r + eps) * wr
    scale_i = jax.lax.rsqrt(var_i + eps) * wi
    scale = jnp.where(is_real, scale_r, scale_i)
    shift = jnp.where(is_real, br, bi)

    o_ref[...] = (centered * scale + shift).astype(o_ref.dtype)


def _round_up(a, b):
    return -(-a // b) * b


def _choose_row_tile(nr, lane_width, itemsize, tile_budget):
    """Row tile TR (multiple of the dtype's sublane count) and padded row count.

    Budget covers the double-buffered in + out blocks at the input dtype PLUS
    ~4 live full-tile f32 temporaries created inside the kernel body
    (x upcast, centered, c2, interleaved scale/shift).
    """
    sublane = max(8, 32 // max(itemsize, 1))   # 8 f32, 16 bf16, 32 int8/fp8
    per_row = 4 * itemsize * lane_width + 4 * 4 * lane_width
    max_rows = max(sublane, (tile_budget // per_row) // sublane * sublane)

    nr_sub = _round_up(nr, sublane)
    tr = min(max_rows, nr_sub)
    # Keep >= 2 grid steps when possible so the "parallel" row axis can shard
    # across v7x's two TensorCores and the DMA pipeline has work to overlap.
    if nr_sub >= 2 * sublane:
        tr = min(tr, max(sublane, (nr_sub // 2) // sublane * sublane))
    tr = max(tr, sublane)
    nr_pad = _round_up(nr, tr)
    return tr, nr_pad


def complex_batch_norm2d(x, w_re, b_re, w_im, b_im, *, eps=1e-5):
    """x: (N, C, H, W, 2).  Returns same shape/dtype."""
    N, C, H, W, two = x.shape
    assert two == 2
    HW = H * W
    L = 2 * HW          # interleaved re/im lane width
    NR = N * C          # flattened (batch, channel) instance rows
    itemsize = jnp.dtype(x.dtype).itemsize

    # Device-aware VMEM budgeting (v7x has only 64 MiB per core).
    try:
        vmem_cap = int(pltpu.get_tpu_info().vmem_capacity_bytes)
    except Exception:
        vmem_cap = 64 * 1024 * 1024            # conservative (v7x per-core)
    vmem_limit = min(vmem_cap // 2, 32 * 1024 * 1024)
    tile_budget = vmem_limit // 2              # headroom for params/regalloc

    TR, NR_pad = _choose_row_tile(NR, L, itemsize, tile_budget)

    # Free reshape of the contiguous layout: lanes are [re, im, re, im, ...].
    x_flat = x.reshape(NR, L)

    # Pack the four affine vectors into one (NR, 4) f32 array (single block,
    # single DMA per grid step instead of four padded (TR, 1) blocks).
    params = jnp.stack(
        [p.astype(jnp.float32) for p in (w_re, b_re, w_im, b_im)], axis=-1
    )                                          # (C, 4)
    params = jnp.broadcast_to(params[None], (N, C, 4)).reshape(NR, 4)

    # Pad the row axis with dummy rows so the tiling never degenerates into a
    # single full-extent block (padded rows are all-zero -> finite outputs,
    # sliced off below).
    if NR_pad != NR:
        x_flat = jnp.pad(x_flat, ((0, NR_pad - NR), (0, 0)))
        params = jnp.pad(params, ((0, NR_pad - NR), (0, 0)))

    grid = (NR_pad // TR,)

    x_spec = pl.BlockSpec((TR, L), lambda r: (r, 0))
    p_spec = pl.BlockSpec((TR, 4), lambda r: (r, 0))

    cost = pl.CostEstimate(
        flops=10 * NR_pad * L,
        transcendentals=2 * NR_pad,
        bytes_accessed=2 * NR_pad * L * itemsize + NR_pad * 4 * 4,
    )

    out_flat = pl.pallas_call(
        functools.partial(_complex_inorm_kernel, eps=float(eps), hw=float(HW)),
        out_shape=jax.ShapeDtypeStruct((NR_pad, L), x.dtype),
        grid_spec=pltpu.PrefetchScalarGridSpec(
            num_scalar_prefetch=0,
            grid=grid,
            in_specs=[x_spec, p_spec],
            out_specs=x_spec,
        ),
        compiler_params=pltpu.CompilerParams(
            dimension_semantics=("parallel",),
            vmem_limit_bytes=vmem_limit,
        ),
        cost_estimate=cost,
    )(x_flat, params)

    if NR_pad != NR:
        out_flat = out_flat[:NR]
    return out_flat.reshape(N, C, H, W, 2)     # free reshape back


def _reference(x, w_re, b_re, w_im, b_im, eps=1e-5):
    """Pure-JAX reference replicating InstanceNorm2d (training mode)."""
    def inorm(v, w, b):
        mean = jnp.mean(v, axis=(-2, -1), keepdims=True)
        var = jnp.mean((v - mean) ** 2, axis=(-2, -1), keepdims=True)
        y = (v - mean) / jnp.sqrt(var + eps)
        return y * w[None, :, None, None] + b[None, :, None, None]

    real = inorm(x[..., 0], w_re, b_re)
    imag = inorm(x[..., 1], w_im, b_im)
    return jnp.stack((real, imag), axis=-1)


if __name__ == "__main__":
    key = jax.random.PRNGKey(0)
    k_x, k_wr, k_br, k_wi, k_bi = jax.random.split(key, 5)

    N, C, H, W = 2, 4, 16, 16
    x = jax.random.normal(k_x, (N, C, H, W, 2), dtype=jnp.float32)

    # InstanceNorm2d default init is weight=1, bias=0; perturb slightly so the
    # affine path is exercised.
    w_re = 1.0 + 0.1 * jax.random.normal(k_wr, (C,), dtype=jnp.float32)
    b_re = 0.1 * jax.random.normal(k_br, (C,), dtype=jnp.float32)
    w_im = 1.0 + 0.1 * jax.random.normal(k_wi, (C,), dtype=jnp.float32)
    b_im = 0.1 * jax.random.normal(k_bi, (C,), dtype=jnp.float32)

    out = complex_batch_norm2d(x, w_re, b_re, w_im, b_im)
    out = jax.block_until_ready(out)

    ref = _reference(x, w_re, b_re, w_im, b_im)
    assert out.shape == (N, C, H, W, 2)
    assert jnp.allclose(out, ref, atol=2e-5, rtol=2e-5), "mismatch vs reference"

    print("KERNEL_OK")
</pallas_src>

<mosaic_0001>
module attributes {stable_mosaic.version = 11 : i64} {
  func.func @_complex_inorm_kernel(%arg0: i32, %arg1: memref<8x512xf32, #tpu.memory_space<vmem>>, %arg2: memref<8x4xf32, #tpu.memory_space<vmem>>, %arg3: memref<8x512xf32, #tpu.memory_space<vmem>>) attributes {dimension_semantics = [#tpu.dimension_semantics<parallel>], iteration_bounds = array<i64: 1>, scalar_prefetch = 0 : i64, scratch_operands = 0 : i64, tpu.core_type = #tpu.core_type<tc>, window_params = [{transform_indices = @transform_0, window_bounds = array<i64: 8, 512>}, {transform_indices = @transform_1, window_bounds = array<i64: 8, 4>}, {transform_indices = @transform_2, window_bounds = array<i64: 8, 512>}]} {
    %c0 = arith.constant 0 : index
    %c0_0 = arith.constant 0 : index
    %0 = vector.load %arg1[%c0, %c0_0] : memref<8x512xf32, #tpu.memory_space<vmem>>, vector<8x512xf32>
    %1 = tpu.iota {dimensions = array<i32: 1>} : vector<1x512xi32>
    %c1_i32 = arith.constant 1 : i32
    %2 = vector.broadcast %c1_i32 : i32 to vector<1x512xi32>
    %3 = arith.andi %1, %2 : vector<1x512xi32>
    %c0_i32 = arith.constant 0 : i32
    %4 = vector.broadcast %c0_i32 : i32 to vector<1x512xi32>
    %5 = arith.cmpi eq, %3, %4 : vector<1x512xi32>
    %cst = arith.constant dense<0.000000e+00> : vector<8xf32>
    %6 = vector.multi_reduction <add>, %0, %cst [1] : vector<8x512xf32> to vector<8xf32>
    %7 = vector.shape_cast %6 : vector<8xf32> to vector<8x1xf32>
    %cst_1 = arith.constant 0.000000e+00 : f32
    %8 = vector.shape_cast %5 : vector<1x512xi1> to vector<1x512xi1>
    %9 = vector.broadcast %8 : vector<1x512xi1> to vector<8x512xi1>
    %10 = vector.broadcast %cst_1 : f32 to vector<8x512xf32>
    %11 = arith.select %9, %0, %10 : vector<8x512xi1>, vector<8x512xf32>
    %cst_2 = arith.constant dense<0.000000e+00> : vector<8xf32>
    %12 = vector.multi_reduction <add>, %11, %cst_2 [1] : vector<8x512xf32> to vector<8xf32>
    %13 = vector.shape_cast %12 : vector<8xf32> to vector<8x1xf32>
    %cst_3 = arith.constant 3.906250e-03 : f32
    %14 = vector.broadcast %cst_3 : f32 to vector<8x1xf32>
    %15 = arith.mulf %13, %14 : vector<8x1xf32>
    %16 = arith.subf %7, %13 : vector<8x1xf32>
    %cst_4 = arith.constant 3.906250e-03 : f32
    %17 = vector.broadcast %cst_4 : f32 to vector<8x1xf32>
    %18 = arith.mulf %16, %17 : vector<8x1xf32>
    %19 = vector.shape_cast %5 : vector<1x512xi1> to vector<1x512xi1>
    %20 = vector.broadcast %19 : vector<1x512xi1> to vector<8x512xi1>
    %21 = vector.shape_cast %15 : vector<8x1xf32> to vector<8x1xf32>
    %22 = vector.broadcast %21 : vector<8x1xf32> to vector<8x512xf32>
    %23 = vector.shape_cast %18 : vector<8x1xf32> to vector<8x1xf32>
    %24 = vector.broadcast %23 : vector<8x1xf32> to vector<8x512xf32>
    %25 = arith.select %20, %22, %24 : vector<8x512xi1>, vector<8x512xf32>
    %26 = arith.subf %0, %25 : vector<8x512xf32>
    %27 = arith.mulf %26, %26 : vector<8x512xf32>
    %cst_5 = arith.constant dense<0.000000e+00> : vector<8xf32>
    %28 = vector.multi_reduction <add>, %27, %cst_5 [1] : vector<8x512xf32> to vector<8xf32>
    %29 = vector.shape_cast %28 : vector<8xf32> to vector<8x1xf32>
    %cst_6 = arith.constant 0.000000e+00 : f32
    %30 = vector.shape_cast %5 : vector<1x512xi1> to vector<1x512xi1>
    %31 = vector.broadcast %30 : vector<1x512xi1> to vector<8x512xi1>
    %32 = vector.broadcast %cst_6 : f32 to vector<8x512xf32>
    %33 = arith.select %31, %27, %32 : vector<8x512xi1>, vector<8x512xf32>
    %cst_7 = arith.constant dense<0.000000e+00> : vector<8xf32>
    %34 = vector.multi_reduction <add>, %33, %cst_7 [1] : vector<8x512xf32> to vector<8xf32>
    %35 = vector.shape_cast %34 : vector<8xf32> to vector<8x1xf32>
    %cst_8 = arith.constant 3.906250e-03 : f32
    %36 = vector.broadcast %cst_8 : f32 to vector<8x1xf32>
    %37 = arith.mulf %35, %36 : vector<8x1xf32>
    %38 = arith.subf %29, %35 : vector<8x1xf32>
    %cst_9 = arith.constant 3.906250e-03 : f32
    %39 = vector.broadcast %cst_9 : f32 to vector<8x1xf32>
    %40 = arith.mulf %38, %39 : vector<8x1xf32>
    %c0_10 = arith.constant 0 : index
    %c0_11 = arith.constant 0 : index
    %41 = vector.load %arg2[%c0_10, %c0_11] : memref<8x4xf32, #tpu.memory_space<vmem>>, vector<8x4xf32>
    %42 = vector.extract_strided_slice %41 {offsets = [0, 0], sizes = [8, 1], strides = [1, 1]} : vector<8x4xf32> to vector<8x1xf32>
    %43 = vector.extract_strided_slice %41 {offsets = [0, 1], sizes = [8, 1], strides = [1, 1]} : vector<8x4xf32> to vector<8x1xf32>
    %44 = vector.extract_strided_slice %41 {offsets = [0, 2], sizes = [8, 1], strides = [1, 1]} : vector<8x4xf32> to vector<8x1xf32>
    %45 = vector.extract_strided_slice %41 {offsets = [0, 3], sizes = [8, 1], strides = [1, 1]} : vector<8x4xf32> to vector<8x1xf32>
    %cst_12 = arith.constant 9.99999974E-6 : f32
    %46 = vector.broadcast %cst_12 : f32 to vector<8x1xf32>
    %47 = arith.addf %37, %46 : vector<8x1xf32>
    %48 = math.rsqrt %47 : vector<8x1xf32>
    %49 = arith.mulf %48, %42 : vector<8x1xf32>
    %cst_13 = arith.constant 9.99999974E-6 : f32
    %50 = vector.broadcast %cst_13 : f32 to vector<8x1xf32>
    %51 = arith.addf %40, %50 : vector<8x1xf32>
    %52 = math.rsqrt %51 : vector<8x1xf32>
    %53 = arith.mulf %52, %44 : vector<8x1xf32>
    %54 = vector.shape_cast %5 : vector<1x512xi1> to vector<1x512xi1>
    %55 = vector.broadcast %54 : vector<1x512xi1> to vector<8x512xi1>
    %56 = vector.shape_cast %49 : vector<8x1xf32> to vector<8x1xf32>
    %57 = vector.broadcast %56 : vector<8x1xf32> to vector<8x512xf32>
    %58 = vector.shape_cast %53 : vector<8x1xf32> to vector<8x1xf32>
    %59 = vector.broadcast %58 : vector<8x1xf32> to vector<8x512xf32>
    %60 = arith.select %55, %57, %59 : vector<8x512xi1>, vector<8x512xf32>
    %61 = vector.shape_cast %5 : vector<1x512xi1> to vector<1x512xi1>
    %62 = vector.broadcast %61 : vector<1x512xi1> to vector<8x512xi1>
    %63 = vector.shape_cast %43 : vector<8x1xf32> to vector<8x1xf32>
    %64 = vector.broadcast %63 : vector<8x1xf32> to vector<8x512xf32>
    %65 = vector.shape_cast %45 : vector<8x1xf32> to vector<8x1xf32>
    %66 = vector.broadcast %65 : vector<8x1xf32> to vector<8x512xf32>
    %67 = arith.select %62, %64, %66 : vector<8x512xi1>, vector<8x512xf32>
    %68 = arith.mulf %26, %60 : vector<8x512xf32>
    %69 = arith.addf %68, %67 : vector<8x512xf32>
    %c0_14 = arith.constant 0 : index
    %c0_15 = arith.constant 0 : index
    %70 = vector.load %arg3[%c0_14, %c0_15] : memref<8x512xf32, #tpu.memory_space<vmem>>, vector<8x512xf32>
    tpu.vector_store %arg3[%c0_14, %c0_15], %69 {strides = array<i32>} : memref<8x512xf32, #tpu.memory_space<vmem>>, vector<8x512xf32>,
    return
  }
  func.func @transform_0(%arg0: i32) -> (i32, i32) {
    %c0_i32 = arith.constant 0 : i32
    %c0_i32_0 = arith.constant 0 : i32
    return %arg0, %c0_i32 : i32, i32
  }
  func.func @transform_1(%arg0: i32) -> (i32, i32) {
    %c0_i32 = arith.constant 0 : i32
    %c0_i32_0 = arith.constant 0 : i32
    return %arg0, %c0_i32 : i32, i32
  }
  func.func @transform_2(%arg0: i32) -> (i32, i32) {
    %c0_i32 = arith.constant 0 : i32
    %c0_i32_0 = arith.constant 0 : i32
    return %arg0, %c0_i32 : i32, i32
  }
}

</mosaic_0001>

<bundles_post_ra>
// kernel: tpu_custom_call.1
= control target key start
LH: loop header
LB: loop body
LE: loop exit
PB: predicated region body
PF: predicated region fallthrough
CT: control target
= control target key end

     0   :  { %7 = vsyncpa [#allocation3], 0  ;;  %s351_s0 = inlined_call_operand.hbm [shape: f32[8,512], index: 0, kind: input, shape index: {}]   ;;  %s352_s1 = inlined_call_operand.vmem [shape: f32[8,4], index: 1, kind: input, shape index: {}]   ;;  %s353_s2 = inlined_call_operand.hbm [shape: f32[8,512], index: 2, kind: output, shape index: {}]  }
   0x1   :  { %8 = vsyncpa [#allocation4], 0  ;;  %s14_s11 = sshll.u32 %s351_s0, 4  ;;  %s245_s12 = smov [#allocation2]   ;;  %s15_s11 = int_to_ptr.hbm [resolvable:$true] %s14_s11 }
   0x2   :  { %s16_s13 = sshll.u32 %s245_s12, 4  ;;  %s17_s13 = int_to_ptr.vmem [resolvable:$true] %s16_s13 }
   0x3   :  { %19 = dma.hbm_to_vmem [thread:$0]  %s15_s11, 512, %s17_s13, [#allocation3]  }
   0x4   :  { %241 = dma.done.wait [#allocation3], 512  }
   0x5   :  { %242 = vsyncadd [#allocation3], 4294966784  ;;  %v30_v0 = vlaneseq  ;;  %v26_v9 = vld [vmem:[#allocation2] sm:$0xff]  ;;  %v27_v10 = vld [vmem:[#allocation2 + $0x8] sm:$0xff]  ;;  %v246_v54 = vmov 3   ;;  %v247_v55 = vmov 1  }
   0x6   :  { %v28_v11 = vld [vmem:[#allocation2 + $0x10] sm:$0xff]  ;;  %v43_v12 = vadd.f32 %v27_v10, %v26_v9  ;;  %v29_v16 = vld [vmem:[#allocation2 + $0x18] sm:$0xff]  ;;  %187 = vset.pattern.permute.xlu1 %v246_v54  ;;  %186 = vset.pattern.permute.xlu0 %v247_v55  ;;  %v97_v56 = vld [vmem:[%s352_s1] sm:$0xff]  ;;  %v248_v57 = vmov 0   ;;  %s250_s1 = smov [#allocation5]   ;;  %s168_s18 = sshll.u32 %s353_s2, 4  ;;  %s169_s18 = int_to_ptr.hbm [resolvable:$true] %s168_s18 }
   0x7   :  { %v31_v1 = vand.u32 127, %v30_v0  ;;  %184 = vset.pattern.permute.xlu2 %v248_v57  ;;  %s166_s15 = sshll.u32 %s250_s1, 4  ;;  %s167_s15 = int_to_ptr.vmem [resolvable:$true] %s166_s15 }
   0x8   :  { %v44_v19 = vadd.f32 %v43_v12, %v28_v11 }
   0x9   :  { %v32_v2 = vadd.s32 128, %v31_v1  ;;  %v33_v3 = vadd.s32 256, %v31_v1  ;;  %v34_v4 = vadd.s32 384, %v31_v1  ;;  %v35_v5 = vand.u32 1, %v31_v1 }
   0xa   :  { %v45_v22 = vadd.f32 %v44_v19, %v29_v16 }
   0xb   :  { %v36_v6 = vand.u32 1, %v32_v2  ;;  %v37_v7 = vand.u32 1, %v33_v3  ;;  %vm269_vm0 = vcmp.eq.s32.totalorder %v35_v5, 0  ;;  %v38_v13 = vand.u32 1, %v34_v4 }
   0xc   :  { %v56_v17 = vsel %vm269_vm0, %v26_v9, 0.0  ;;  %46 = vadd.xlane.f32.xlu0 %v45_v22 }
   0xd   :  { %vm273_vm1 = vcmp.eq.s32.totalorder %v36_v6, 0  ;;  %vm277_vm2 = vcmp.eq.s32.totalorder %v37_v7, 0  ;;  %vm287_vm3 = vcmp.eq.s32.totalorder %v38_v13, 0 }
   0xe   :  { %v57_v18 = vsel %vm273_vm1, %v27_v10, 0.0  ;;  %v58_v21 = vsel %vm277_vm2, %v28_v11, 0.0  ;;  %v59_v25 = vsel %vm287_vm3, %v29_v16, 0.0 }
   0xf   :  { %v60_v20 = vadd.f32 %v57_v18, %v56_v17 }
  0x11   :  { %v61_v24 = vadd.f32 %v60_v20, %v58_v21  ;;  %v249_v20 = vmov 2  }
  0x13   :  { %v62_v26 = vadd.f32 %v61_v24, %v59_v25 }
  0x15   :  { %63 = vadd.xlane.f32.xlu0 %v62_v26 }
  0x29   :  { %138 = vperm.xlu0 %186, %v97_v56  }
  0x31   :  { %188 = vset.pattern.permute.xlu0 %v246_v54 }
  0x7f   :  { %v47_v27 = vpop.xlane.xlu0 %46 }
  0x88   :  { %v64_v28 = vpop.xlane.xlu0 %63 }
  0x89   :  { %v66_v29 = vsub.f32 %v47_v27, %v64_v28  ;;  %v65_v30 = vmul.f32 0.00390625, %v64_v28 }
  0x8b   :  { %v67_v31 = vmul.f32 0.00390625, %v66_v29 }
  0x8d   :  { %v68_v32 = vsel %vm269_vm0, %v65_v30, %v67_v31  ;;  %v69_v33 = vsel %vm273_vm1, %v65_v30, %v67_v31  ;;  %v70_v34 = vsel %vm277_vm2, %v65_v30, %v67_v31  ;;  %v71_v35 = vsel %vm287_vm3, %v65_v30, %v67_v31 }
  0x8e   :  { %v301_v36 = vsub.f32 %v26_v9, %v68_v32  ;;  %v303_v37 = vsub.f32 %v27_v10, %v69_v33  ;;  %v305_v38 = vsub.f32 %v28_v11, %v70_v34  ;;  %v307_v39 = vsub.f32 %v29_v16, %v71_v35 }
  0x90   :  { %v76_v40 = vmul.f32 %v301_v36, %v301_v36  ;;  %v77_v41 = vmul.f32 %v303_v37, %v303_v37  ;;  %v78_v42 = vmul.f32 %v305_v38, %v305_v38  ;;  %v79_v46 = vmul.f32 %v307_v39, %v307_v39 }
  0x92   :  { %v80_v43 = vadd.f32 %v77_v41, %v76_v40  ;;  %v85_v44 = vsel %vm269_vm0, %v76_v40, 0.0  ;;  %v86_v45 = vsel %vm273_vm1, %v77_v41, 0.0  ;;  %v87_v50 = vsel %vm277_vm2, %v78_v42, 0.0 }
  0x93   :  { %v89_v49 = vadd.f32 %v86_v45, %v85_v44  ;;  %v88_v52 = vsel %vm287_vm3, %v79_v46, 0.0 }
  0x94   :  { %v81_v47 = vadd.f32 %v80_v43, %v78_v42 }
  0x95   :  { %v90_v51 = vadd.f32 %v89_v49, %v87_v50 }
  0x96   :  { %v82_v48 = vadd.f32 %v81_v47, %v79_v46 }
  0x97   :  { %v91_v53 = vadd.f32 %v90_v51, %v88_v52 }
  0x98   :  { %83 = vadd.xlane.f32.xlu1 %v82_v48 }
  0x9b   :  { %v139_v24 = vpop.permute.xlu0 %138 }
  0xa0   :  { %92 = vadd.xlane.f32.xlu1 %v91_v53 }
  0xb9   :  { %142 = vperm.xlu1 %187, %v97_v56  }
 0x10b   :  { %v84_v58 = vpop.xlane.xlu1 %83 }
 0x113   :  { %v93_v59 = vpop.xlane.xlu1 %92 }
 0x114   :  { %v94_v60 = vmul.f32 0.00390625, %v93_v59  ;;  %v95_v61 = vsub.f32 %v84_v58, %v93_v59 }
 0x116   :  { %v96_v62 = vmul.f32 0.00390625, %v95_v61  ;;  %v98_v63 = vadd.f32 1e-05, %v94_v60 }
 0x118   :  { %189 = vrsqrt.f32 %v98_v63  ;;  %v110_v0 = vadd.f32 1e-05, %v96_v62  ;;  %vm105_vm5 = vweird.f32 %v98_v63 }
 0x11a   :  { %191 = vrsqrt.f32 %v110_v0  ;;  %vm117_vm8 = vweird.f32 %v110_v0 }
 0x11e   :  { %v190_v1 = vpop.eup %189 }
 0x11f   :  { %v100_v2 = vmul.f32 %v190_v1, %v98_v63  ;;  %vm106_vm4 = vweird.f32 %v190_v1 }
 0x120   :  { %v192_v3 = vpop.eup %191  ;;  %vm107_vm6 = vmor %vm105_vm5, %vm106_vm4 }
 0x121   :  { %v101_v4 = vmul.f32 %v190_v1, %v100_v2  ;;  %v112_v5 = vmul.f32 %v192_v3, %v110_v0  ;;  %vm118_vm7 = vweird.f32 %v192_v3 }
 0x122   :  { %vm119_vm9 = vmor %vm117_vm8, %vm118_vm7 }
 0x123   :  { %v102_v6 = vmul.f32 0.5, %v101_v4  ;;  %v113_v7 = vmul.f32 %v192_v3, %v112_v5 }
 0x125   :  { %v114_v9 = vmul.f32 0.5, %v113_v7  ;;  %v103_v10 = vsub.f32 1.5, %v102_v6 }
 0x127   :  { %v104_v11 = vmul.f32 %v190_v1, %v103_v10  ;;  %v115_v12 = vsub.f32 1.5, %v114_v9 }
 0x129   :  { %v108_v13 = vsel %vm107_vm6, %v190_v1, %v104_v11  ;;  %v116_v17 = vmul.f32 %v192_v3, %v115_v12 }
 0x12a   :  { %v109_v16 = vmul.f32 %v108_v13, %v97_v56 }
 0x12b   :  { %v120_v18 = vsel %vm119_vm9, %v192_v3, %v116_v17  ;;  %v143_v22 = vpop.permute.xlu1 %142 }
 0x12c   :  { %124 = vperm.xlu2 %184, %v109_v16   ;;  %v121_v19 = vmul.f32 %v120_v18, %v97_v56  ;;  %v145_v26 = vsel %vm269_vm0, %v139_v24, %v143_v22  ;;  %v146_v27 = vsel %vm273_vm1, %v139_v24, %v143_v22  ;;  %v147_v28 = vsel %vm277_vm2, %v139_v24, %v143_v22 }
 0x12d   :  { %v148_v29 = vsel %vm287_vm3, %v139_v24, %v143_v22 }
 0x134   :  { %185 = vset.pattern.permute.xlu2 %v249_v20 }
 0x135   :  { %129 = vperm.xlu2 %185, %v121_v19  }
 0x186   :  { %v125_v21 = vpop.permute.xlu2 %124 }
 0x18f   :  { %v130_v25 = vpop.permute.xlu2 %129 }
 0x190   :  { %v132_v30 = vsel %vm269_vm0, %v125_v21, %v130_v25  ;;  %v133_v31 = vsel %vm273_vm1, %v125_v21, %v130_v25  ;;  %v134_v32 = vsel %vm277_vm2, %v125_v21, %v130_v25  ;;  %v135_v33 = vsel %vm287_vm3, %v125_v21, %v130_v25 }
 0x191   :  { %v149_v34 = vmul.f32 %v132_v30, %v301_v36  ;;  %v150_v35 = vmul.f32 %v133_v31, %v303_v37  ;;  %v151_v40 = vmul.f32 %v134_v32, %v305_v38  ;;  %v152_v41 = vmul.f32 %v135_v33, %v307_v39 }
 0x193   :  { %v153_v42 = vadd.f32 %v149_v34, %v145_v26  ;;  %v154_v8 = vadd.f32 %v150_v35, %v146_v27  ;;  %v155_v43 = vadd.f32 %v151_v40, %v147_v28  ;;  %v156_v14 = vadd.f32 %v152_v41, %v148_v29 }
 0x195   :  { %157 = vst [vmem:[#allocation5] sm:$0xff] %v153_v42 }
 0x196   :  { %158 = vst [vmem:[#allocation5 + $0x8] sm:$0xff] %v154_v8 }
 0x197   :  { %159 = vst [vmem:[#allocation5 + $0x10] sm:$0xff] %v155_v43 }
 0x198   :  { %160 = vst [vmem:[#allocation5 + $0x18] sm:$0xff] %v156_v14 }
 0x199   :  { %171 = dma.vmem_to_hbm [thread:$0]  %s167_s15, 512, %s169_s18, [#allocation4]  }
 0x19a   :  { %243 = dma.done.wait [#allocation4], 512  }
 0x19b   :  { %244 = vsyncadd [#allocation4], 4294966784 }
 0x19c   :  { %176 = vsyncpa [#allocation3], 1 }
 0x19d   :  { %177 = vsyncpa [#allocation4], 1 }

</bundles_post_ra>
